<compile_context>
chip_gen: v7x
topology: tpu7x:2x2x1
jax: 0.10.0
libtpu: 0.0.40
codegen_flags: <defaults>
</compile_context>

<pallas_src>
import jax
import jax.numpy as jnp
from jax.experimental import pallas as pl
from jax.experimental.pallas import tpu as pltpu


def _round_up(n, m):
    return ((n + m - 1) // m) * m


def _vmem_budget_bytes():
    """Generation-aware scoped-VMEM budget (bytes) and matching compiler limit."""
    phys = 64 * 1024 * 1024  # conservative default (v7x per-TC VMEM)
    try:
        phys = int(pltpu.get_tpu_info().vmem_capacity_bytes)
    except Exception:
        pass
    budget = min(int(phys * 0.6), 48 * 1024 * 1024)     # ~38 MiB on v7x, 48 MiB on v5e/v6e
    limit = min(budget + 8 * 1024 * 1024, int(phys * 0.85))
    return budget, limit


def _mlp_zerolayer_kernel(x_ref, w_ref, b_ref, o_ref, acc_ref):
    k = pl.program_id(1)

    @pl.when(k == 0)
    def _init():
        acc_ref[...] = jnp.zeros_like(acc_ref)

    # Linear projection on the MXU, accumulated in f32 across K blocks.
    acc_ref[...] += jnp.dot(x_ref[...], w_ref[...],
                            preferred_element_type=jnp.float32)

    @pl.when(k == pl.num_programs(1) - 1)
    def _finalize():
        logits = acc_ref[...] + b_ref[...].astype(jnp.float32)
        # Numerically-stable softmax over the last (lane) axis. Padded lanes
        # carry a -1e30 bias, so exp() underflows to 0 and they do not skew the
        # normalization.
        m = jnp.max(logits, axis=-1, keepdims=True)
        e = jnp.exp(logits - m)
        denom = jnp.sum(e, axis=-1, keepdims=True)
        # Exact divide (not pl.reciprocal(approx=True)): the kernel is
        # HBM-bound, and exact normalization keeps row sums at 1.
        o_ref[...] = (e / denom).astype(o_ref.dtype)


def net_mlp_zerolayer_forward(x, w, b, *, max_tile_b=2048, max_tile_k=None):
    """Eval-mode forward: softmax(x @ w + b, axis=-1).

    x: [B, D_in], w: [D_in, D_out] (transpose of the PyTorch weight),
    b: [D_out] or [1, D_out]. Returns [B, D_out] in x.dtype.
    """
    B, D_in = x.shape
    assert w.shape[0] == D_in
    D_out = w.shape[1]
    b = jnp.asarray(b).reshape(1, D_out)
    out_dtype = x.dtype
    x_item = jnp.dtype(x.dtype).itemsize
    w_item = jnp.dtype(w.dtype).itemsize
    o_item = jnp.dtype(out_dtype).itemsize

    budget, vmem_limit = _vmem_budget_bytes()

    # ---- Lane padding: keep the output lane-dense (multiple of 128). ----
    D_out_p = max(_round_up(D_out, 128), 128)
    if D_out_p != D_out:
        w = jnp.pad(w, ((0, 0), (0, D_out_p - D_out)))
        # Padded logits get a very negative bias -> exp() == 0 -> no softmax skew.
        b = jnp.pad(b, ((0, 0), (0, D_out_p - D_out)), constant_values=-1e30)

    # ---- K (D_in) tiling: stream the weight if it does not fit the budget. ----
    w_block_budget = budget // 2  # at most ~half the budget for the 2x-buffered weight
    full_w_bytes = 2 * D_in * D_out_p * w_item
    k_cap = D_in if max_tile_k is None else max_tile_k
    if full_w_bytes <= w_block_budget and D_in <= k_cap:
        tile_k, num_k, D_in_p = D_in, 1, D_in
    else:
        rows = w_block_budget // (2 * D_out_p * w_item)
        tile_k = max(128, (min(rows, k_cap) // 128) * 128)
        D_in_p = _round_up(D_in, tile_k)
        num_k = D_in_p // tile_k
        if D_in_p != D_in:  # zero-pad the reduction dim (does not change x @ w)
            x = jnp.pad(x, ((0, 0), (0, D_in_p - D_in)))
            w = jnp.pad(w, ((0, D_in_p - D_in), (0, 0)))

    # ---- Batch tiling: biggest tile that fits the remaining budget. ----
    fixed_bytes = 2 * tile_k * D_out_p * w_item + 2 * D_out_p * w_item
    per_row_bytes = (2 * tile_k * x_item       # x block (double-buffered)
                     + 2 * D_out_p * o_item    # out block (double-buffered)
                     + 4 * D_out_p * 4)        # f32 accumulator + softmax temporaries
    avail = max(budget - fixed_bytes, 8 * per_row_bytes)
    tile_cap = max(8, min(_round_up(max_tile_b, 8),
                          (avail // per_row_bytes) // 8 * 8))

    B8 = _round_up(B, 8)
    if B8 <= tile_cap:
        if B8 >= 1024 and B8 % 16 == 0:
            tile_b = B8 // 2  # >=2 grid steps so v7x's second TensorCore gets fed
        else:
            tile_b = B8
    else:
        # Prefer a tile that divides the 8-padded batch -> no trailing pad rows
        # and no wrapper-side row slice (an extra full output round trip).
        tile_b = 8
        d = tile_cap
        while d >= 8:
            if B8 % d == 0:
                tile_b = d
                break
            d -= 8
        if tile_b < max(128, tile_cap // 4):
            tile_b = tile_cap  # divisor too small; fall back to padding + slice

    B_p = _round_up(B8, tile_b)
    if B_p != B:
        x = jnp.pad(x, ((0, B_p - B), (0, 0)))

    grid = (B_p // tile_b, num_k)
    out = pl.pallas_call(
        _mlp_zerolayer_kernel,
        out_shape=jax.ShapeDtypeStruct((B_p, D_out_p), out_dtype),
        grid=grid,
        in_specs=[
            # x: tile along batch and (optionally) the reduction dim.
            pl.BlockSpec((tile_b, tile_k), lambda i, k: (i, k)),
            # Weight: streamed over K; constant over the batch axis (resident
            # when num_k == 1, pipelined otherwise).
            pl.BlockSpec((tile_k, D_out_p), lambda i, k: (k, 0)),
            # Bias: resident.
            pl.BlockSpec((1, D_out_p), lambda i, k: (0, 0)),
        ],
        out_specs=pl.BlockSpec((tile_b, D_out_p), lambda i, k: (i, 0)),
        scratch_shapes=[pltpu.VMEM((tile_b, D_out_p), jnp.float32)],
        compiler_params=pltpu.CompilerParams(
            dimension_semantics=("parallel", "arbitrary"),
            vmem_limit_bytes=int(vmem_limit),
        ),
    )(x, w, b)

    if B_p != B or D_out_p != D_out:
        out = out[:B, :D_out]
    return out


if __name__ == "__main__":
    init_std = 0.02
    key = jax.random.PRNGKey(0)
    k1, k2, k3, k4, k5, k6, k7 = jax.random.split(key, 7)

    def ref_forward(x, w, b):
        logits = jnp.dot(x, w, preferred_element_type=jnp.float32) + jnp.asarray(b).reshape(1, -1)
        return jax.nn.softmax(logits, axis=-1)

    def check(out, ref, name):
        assert out.shape == ref.shape, f"{name}: shape {out.shape} vs {ref.shape}"
        err = float(jnp.max(jnp.abs(out - ref)))
        assert err < 1e-4, f"{name}: max abs err {err}"
        rs = float(jnp.max(jnp.abs(jnp.sum(out, axis=-1) - 1.0)))
        assert rs < 1e-3, f"{name}: row sums off by {rs}"

    # Case 1: small shapes consistent with the module (single grid step).
    B, D_in, D_out = 16, 32, 128
    x = jax.random.normal(k1, (B, D_in), dtype=jnp.float32)
    w = init_std * jax.random.normal(k2, (D_in, D_out), dtype=jnp.float32)  # W.T of PyTorch weight
    bias = jnp.zeros((D_out,), dtype=jnp.float32)                           # init_weights(): zero bias
    out = jax.block_until_ready(net_mlp_zerolayer_forward(x, w, bias))
    check(out, ref_forward(x, w, bias), "case1")

    # Case 2: awkward sizes to exercise the batch / lane padding paths, nonzero bias.
    B2, D_in2, D_out2 = 13, 32, 100
    x2 = jax.random.normal(k3, (B2, D_in2), dtype=jnp.float32)
    w2 = init_std * jax.random.normal(k4, (D_in2, D_out2), dtype=jnp.float32)
    b2 = 0.1 * jax.random.normal(k5, (D_out2,), dtype=jnp.float32)
    out2 = jax.block_until_ready(net_mlp_zerolayer_forward(x2, w2, b2))
    check(out2, ref_forward(x2, w2, b2), "case2")

    # Case 3: force the K-streaming (weight-doesn't-fit) accumulator path.
    B3, D_in3, D_out3 = 64, 300, 100
    x3 = jax.random.normal(k6, (B3, D_in3), dtype=jnp.float32)
    w3 = init_std * jax.random.normal(k7, (D_in3, D_out3), dtype=jnp.float32)
    b3 = jnp.zeros((D_out3,), dtype=jnp.float32)
    out3 = jax.block_until_ready(net_mlp_zerolayer_forward(x3, w3, b3, max_tile_k=128))
    check(out3, ref_forward(x3, w3, b3), "case3")

    print("KERNEL_OK")
</pallas_src>

<mosaic_0001>
module attributes {stable_mosaic.version = 11 : i64} {
  func.func @_mlp_zerolayer_kernel(%arg0: i32, %arg1: i32, %arg2: memref<16x32xf32, #tpu.memory_space<vmem>>, %arg3: memref<32x128xf32, #tpu.memory_space<vmem>>, %arg4: memref<1x128xf32, #tpu.memory_space<vmem>>, %arg5: memref<16x128xf32, #tpu.memory_space<vmem>>, %arg6: memref<16x128xf32, #tpu.memory_space<vmem>>) attributes {dimension_semantics = [#tpu.dimension_semantics<parallel>, #tpu.dimension_semantics<arbitrary>], iteration_bounds = array<i64: 1, 1>, scalar_prefetch = 0 : i64, scratch_operands = 1 : i64, tpu.core_type = #tpu.core_type<tc>, window_params = [{transform_indices = @transform_0, window_bounds = array<i64: 16, 32>}, {transform_indices = @transform_1, window_bounds = array<i64: 32, 128>}, {pipeline_mode = #tpu.pipeline_mode<synchronous>, transform_indices = @transform_2, window_bounds = array<i64: 1, 128>}, {transform_indices = @transform_3, window_bounds = array<i64: 16, 128>}]} {
    %c0_i32 = arith.constant 0 : i32
    %0 = arith.cmpi eq, %arg1, %c0_i32 : i32
    %1 = arith.extui %0 : i1 to i32
    %c0_i32_0 = arith.constant 0 : i32
    %2 = arith.cmpi ne, %1, %c0_i32_0 : i32
    scf.if %2 {
      %cst_10 = arith.constant 0.000000e+00 : f32
      %12 = vector.broadcast %cst_10 : f32 to vector<16x128xf32>
      %c0_11 = arith.constant 0 : index
      %c0_12 = arith.constant 0 : index
      %13 = vector.load %arg6[%c0_11, %c0_12] : memref<16x128xf32, #tpu.memory_space<vmem>>, vector<16x128xf32>
      tpu.vector_store %arg6[%c0_11, %c0_12], %12 {strides = array<i32>} : memref<16x128xf32, #tpu.memory_space<vmem>>, vector<16x128xf32>,
    } else {
    }
    %c0 = arith.constant 0 : index
    %c0_1 = arith.constant 0 : index
    %3 = vector.load %arg6[%c0, %c0_1] : memref<16x128xf32, #tpu.memory_space<vmem>>, vector<16x128xf32>
    %c0_2 = arith.constant 0 : index
    %c0_3 = arith.constant 0 : index
    %4 = vector.load %arg2[%c0_2, %c0_3] : memref<16x32xf32, #tpu.memory_space<vmem>>, vector<16x32xf32>
    %c0_4 = arith.constant 0 : index
    %c0_5 = arith.constant 0 : index
    %5 = vector.load %arg3[%c0_4, %c0_5] : memref<32x128xf32, #tpu.memory_space<vmem>>, vector<32x128xf32>
    %cst = arith.constant dense<0.000000e+00> : vector<16x128xf32>
    %6 = tpu.matmul %4, %5, %cst {dimension_numbers = #tpu.dot_dimension_numbers<[1], [0], [0], [1], [0, 0, 1, 1], [], []>} : vector<16x32xf32>, vector<32x128xf32>, vector<16x128xf32> -> vector<16x128xf32>
    %7 = arith.addf %3, %6 : vector<16x128xf32>
    %c0_6 = arith.constant 0 : index
    %c0_7 = arith.constant 0 : index
    %8 = vector.load %arg6[%c0_6, %c0_7] : memref<16x128xf32, #tpu.memory_space<vmem>>, vector<16x128xf32>
    tpu.vector_store %arg6[%c0_6, %c0_7], %7 {strides = array<i32>} : memref<16x128xf32, #tpu.memory_space<vmem>>, vector<16x128xf32>,
    %c0_i32_8 = arith.constant 0 : i32
    %9 = arith.cmpi eq, %arg1, %c0_i32_8 : i32
    %10 = arith.extui %9 : i1 to i32
    %c0_i32_9 = arith.constant 0 : i32
    %11 = arith.cmpi ne, %10, %c0_i32_9 : i32
    scf.if %11 {
      %c0_10 = arith.constant 0 : index
      %c0_11 = arith.constant 0 : index
      %12 = vector.load %arg6[%c0_10, %c0_11] : memref<16x128xf32, #tpu.memory_space<vmem>>, vector<16x128xf32>
      %c0_12 = arith.constant 0 : index
      %c0_13 = arith.constant 0 : index
      %13 = vector.load %arg4[%c0_12, %c0_13] : memref<1x128xf32, #tpu.memory_space<vmem>>, vector<1x128xf32>
      %14 = vector.broadcast %13 : vector<1x128xf32> to vector<16x128xf32>
      %15 = arith.addf %12, %14 : vector<16x128xf32>
      %cst_14 = arith.constant dense<0xFF800000> : vector<16xf32>
      %16 = vector.multi_reduction <maximumf>, %15, %cst_14 [1] : vector<16x128xf32> to vector<16xf32>
      %17 = vector.shape_cast %16 : vector<16xf32> to vector<16x1xf32>
      %18 = vector.broadcast %17 : vector<16x1xf32> to vector<16x128xf32>
      %19 = arith.subf %15, %18 : vector<16x128xf32>
      %20 = math.exp %19 : vector<16x128xf32>
      %cst_15 = arith.constant dense<0.000000e+00> : vector<16xf32>
      %21 = vector.multi_reduction <add>, %20, %cst_15 [1] : vector<16x128xf32> to vector<16xf32>
      %22 = vector.shape_cast %21 : vector<16xf32> to vector<16x1xf32>
      %23 = vector.broadcast %22 : vector<16x1xf32> to vector<16x128xf32>
      %24 = arith.divf %20, %23 : vector<16x128xf32>
      %c0_16 = arith.constant 0 : index
      %c0_17 = arith.constant 0 : index
      %25 = vector.load %arg5[%c0_16, %c0_17] : memref<16x128xf32, #tpu.memory_space<vmem>>, vector<16x128xf32>
      tpu.vector_store %arg5[%c0_16, %c0_17], %24 {strides = array<i32>} : memref<16x128xf32, #tpu.memory_space<vmem>>, vector<16x128xf32>,
    } else {
    }
    return
  }
  func.func @transform_0(%arg0: i32, %arg1: i32) -> (i32, i32) {
    %c0_i32 = arith.constant 0 : i32
    return %arg0, %arg1 : i32, i32
  }
  func.func @transform_1(%arg0: i32, %arg1: i32) -> (i32, i32) {
    %c0_i32 = arith.constant 0 : i32
    %c0_i32_0 = arith.constant 0 : i32
    return %arg1, %c0_i32 : i32, i32
  }
  func.func @transform_2(%arg0: i32, %arg1: i32) -> (i32, i32) {
    %c0_i32 = arith.constant 0 : i32
    %c0_i32_0 = arith.constant 0 : i32
    %c0_i32_1 = arith.constant 0 : i32
    return %c0_i32, %c0_i32_0 : i32, i32
  }
  func.func @transform_3(%arg0: i32, %arg1: i32) -> (i32, i32) {
    %c0_i32 = arith.constant 0 : i32
    %c0_i32_0 = arith.constant 0 : i32
    return %arg0, %c0_i32 : i32, i32
  }
}

</mosaic_0001>

<bundles_post_ra>
// kernel: tpu_custom_call.1
= control target key start
LH: loop header
LB: loop body
LE: loop exit
PB: predicated region body
PF: predicated region fallthrough
CT: control target
= control target key end

     0   :  { %8 = vsyncpa [#allocation4], 0  ;;  %s381_s0 = inlined_call_operand.hbm [shape: f32[16,32], index: 0, kind: input, shape index: {}]   ;;  %s382_s1 = inlined_call_operand.hbm [shape: f32[32,128], index: 1, kind: input, shape index: {}]   ;;  %s383_s2 = inlined_call_operand.vmem [shape: f32[1,128], index: 2, kind: input, shape index: {}]   ;;  %s384_s3 = inlined_call_operand.hbm [shape: f32[16,128], index: 3, kind: output, shape index: {}]  }
   0x1   :  { %9 = vsyncpa [#allocation7], 0 }
   0x2   :  { %10 = vsyncpa [#allocation5], 0  ;;  %s308_s12 = smov [#allocation3]   ;;  %s236_s16 = scalar_lea.hbm %s381_s0, 256 }
   0x3   :  { %s16_s13 = sshll.u32 %s308_s12, 4  ;;  %p237_p0 = scmp.ne.s32.totalorder %s381_s0, %s236_s16  ;;  %s17_s13 = int_to_ptr.vmem [resolvable:$true] %s16_s13 }
   0x4   :  { %p240_p1 = scmp.lt.u32.totalorder %s236_s16, %s381_s0 }
   0x6   :  { %p242_p2 = pnand %p240_p1, %p237_p0 }
   0x8   :  { %245 = shalt.err (!%p242_p2)
}
   0x9   :  { %s246_s21 = scalar_lea.vmem %s17_s13, 256  ;;  %p251_p4 = scmp.lt.s32.totalorder %s17_s13, %s17_s13 }
   0xa   :  { %p247_p3 = scmp.ne.s32.totalorder %s17_s13, %s246_s21  ;;  %p252_p5 = scmp.lt.s32.totalorder %s246_s21, %s246_s21 }
   0xc   :  { %p253_p6 = por %p252_p5, %p251_p4 }
   0xe   :  { %p254_p7 = pnand %p253_p6, %p247_p3 }
  0x10   :  { %257 = shalt.err (!%p254_p7)
}
  0x11   :  { %s309_s22 = smov 128   ;;  %s310_s23 = smov 8  }
  0x12   :  { %22 = dma.hbm_to_vmem [thread:$0]  %s381_s0, 256, %s17_s13, [#allocation4], %s309_s22, %s309_s22, %s310_s23  }
  0x13   :  { %s311_s26 = smov [#allocation6]   ;;  %s258_s30 = scalar_lea.hbm %s382_s1, 512 }
  0x14   :  { %s28_s27 = sshll.u32 %s311_s26, 4  ;;  %p259_p8 = scmp.ne.s32.totalorder %s382_s1, %s258_s30  ;;  %s29_s27 = int_to_ptr.vmem [resolvable:$true] %s28_s27 }
  0x15   :  { %p262_p9 = scmp.lt.u32.totalorder %s258_s30, %s382_s1 }
  0x17   :  { %p264_p10 = pnand %p262_p9, %p259_p8 }
  0x19   :  { %267 = shalt.err (!%p264_p10)
}
  0x1a   :  { %s268_s8 = scalar_lea.vmem %s29_s27, 512  ;;  %p273_p12 = scmp.lt.s32.totalorder %s29_s27, %s29_s27 }
  0x1b   :  { %p269_p11 = scmp.ne.s32.totalorder %s29_s27, %s268_s8  ;;  %p274_p13 = scmp.lt.s32.totalorder %s268_s8, %s268_s8 }
  0x1d   :  { %p275_p0 = por %p274_p13, %p273_p12 }
  0x1f   :  { %p276_p1 = pnand %p275_p0, %p269_p11 }
  0x21   :  { %279 = shalt.err (!%p276_p1)
}
  0x22   :  { %34 = dma.hbm_to_vmem [thread:$0]  %s382_s1, 512, %s29_s27, [#allocation7], %s309_s22, %s309_s22, %s310_s23  }
  0x23   :  { %302 = dma.done.wait [#allocation4], 256  }
  0x24   :  { %303 = vsyncadd [#allocation4], 4294967040 }
  0x25   :  { %304 = dma.done.wait [#allocation7], 512  }
  0x26   :  { %305 = vsyncadd [#allocation7], 4294966784  ;;  %vm57_vm0 = vcmask 261120   ;;  %v53_v0 = vld [vmem:[#allocation6] sm:$0xff]  ;;  %v54_v1 = vld [vmem:[#allocation6 + $0x8] sm:$0xff] }
  0x27   :  { %v55_v2 = vld [vmem:[#allocation6 + $0x10] sm:$0xff]  ;;  %v215_v3 = vpack.c.bf16 %v54_v1, %v53_v0  ;;  %v56_v4 = vld [vmem:[#allocation6 + $0x18] sm:$0xff] }
  0x28   :  { %v51_v5 = vld [vmem:[#allocation3] sm:$0xff]  ;;  %v219_v6 = vpack.c.bf16 %v56_v4, %v55_v2  ;;  %v52_v7 = vld [vmem:[#allocation3 + $0x8] sm:$0xff] }
  0x29   :  { %212 = vmatprep.mubr.msk.f32.mxu0 %vm57_vm0, %v51_v5  ;;  %216 = vmatprep.subr.bf16.mxu0 %v215_v3  ;;  %v197_v8 = vld [vmem:[%s383_s2] ss:$0 sm:$0xff]  ;;  %s312_s2 = smov [#allocation8]  }
  0x2a   :  { %218 = vmatpush3.bf16.msra.mxu0 %v215_v3  ;;  %s182_s11 = sshll.u32 %s312_s2, 4  ;;  %s183_s11 = int_to_ptr.vmem [resolvable:$true] %s182_s11 }
  0x2b   :  { %220 = vmatprep.subr.bf16.mxu0 %v219_v6  ;;  %s280_s12 = scalar_lea.vmem %s183_s11, 256  ;;  %p285_p3 = scmp.lt.s32.totalorder %s183_s11, %s183_s11 }
  0x2c   :  { %p281_p2 = scmp.ne.s32.totalorder %s183_s11, %s280_s12  ;;  %p286_p4 = scmp.lt.s32.totalorder %s280_s12, %s280_s12 }
  0x2e   :  { %222 = vmatpush3.bf16.msra.mxu0 %v219_v6  ;;  %p287_p5 = por %p286_p4, %p285_p3 }
  0x30   :  { %p288_p6 = pnand %p287_p5, %p281_p2 }
  0x31   :  { %213 = vmatmul.mubr.msk.f32.vlgmr.msra.gmra.mrb[0].mxu0 %vm57_vm0, %v52_v7 }
 0x104   :  { %v214_v9 = vpop.f32.mrb[0].mxu0 }
 0x105   :  { %v130_v10 = vpop.f32.mrb[1].mxu0  ;;  %v156_v12 = vadd.f32 %v214_v9, %v197_v8 }
 0x106   :  { %v155_v11 = vadd.f32 %v197_v8, %v130_v10 }
 0x108   :  { %157 = vmax.xlane.f32.xlu0 %v155_v11 }
 0x10c   :  { %159 = vmax.xlane.f32.xlu0 %v156_v12 }
 0x195   :  { %v158_v13 = vpop.xlane.xlu0 %157 }
 0x196   :  { %v161_v14 = vsub.f32 %v155_v11, %v158_v13 }
 0x198   :  { %v163_v15 = vmul.f32 1.442695, %v161_v14 }
 0x199   :  { %v160_v16 = vpop.xlane.xlu0 %159 }
 0x19a   :  { %228 = vpow2.f32 %v163_v15  ;;  %v162_v17 = vsub.f32 %v156_v12, %v160_v16 }
 0x19c   :  { %v165_v18 = vmul.f32 1.442695, %v162_v17 }
 0x19e   :  { %230 = vpow2.f32 %v165_v18 }
 0x1a4   :  { %v229_v19 = vpop.eup %228 }
 0x1a5   :  { %167 = vadd.xlane.f32.xlu1 %v229_v19 }
 0x1a8   :  { %v231_v20 = vpop.eup %230 }
 0x1a9   :  { %169 = vadd.xlane.f32.xlu1 %v231_v20 }
 0x232   :  { %v168_v21 = vpop.xlane.xlu1 %167 }
 0x233   :  { %232 = vrcp.f32 %v168_v21 }
 0x236   :  { %v170_v22 = vpop.xlane.xlu1 %169 }
 0x237   :  { %234 = vrcp.f32 %v170_v22 }
 0x23d   :  { %v233_v23 = vpop.eup %232 }
 0x23e   :  { %v172_v24 = vmul.f32 %v233_v23, %v229_v19 }
 0x240   :  { %175 = vst [vmem:[#allocation8] sm:$0xff] %v172_v24 }
 0x241   :  { %v235_v25 = vpop.eup %234 }
 0x242   :  { %v174_v26 = vmul.f32 %v235_v25, %v231_v20 }
 0x244   :  { %176 = vst [vmem:[#allocation8 + $0x8] sm:$0xff] %v174_v26 }
 0x245   :  { %291 = shalt.err (!%p288_p6)
}
 0x246   :  { %s292_s15 = scalar_lea.hbm %s384_s3, 256 }
 0x247   :  { %p293_p7 = scmp.ne.s32.totalorder %s384_s3, %s292_s15  ;;  %p296_p8 = scmp.lt.u32.totalorder %s292_s15, %s384_s3 }
 0x249   :  { %p298_p9 = pnand %p296_p8, %p293_p7 }
 0x24b   :  { %301 = shalt.err (!%p298_p9)
}
 0x24c   :  { %188 = dma.vmem_to_hbm [thread:$0]  %s183_s11, 256, %s384_s3, [#allocation5], %s309_s22, %s309_s22, %s310_s23  }
 0x24d   :  { %306 = dma.done.wait [#allocation5], 256  }
 0x24e   :  { %307 = vsyncadd [#allocation5], 4294967040 }
 0x24f   :  { %192 = vsyncpa [#allocation4], 1 }
 0x250   :  { %193 = vsyncpa [#allocation7], 1 }
 0x251   :  { %194 = vsyncpa [#allocation5], 1 }

</bundles_post_ra>
